<compile_context>
chip_gen: v5e
topology: v5e:2x2
jax: 0.10.0
libtpu: 0.0.40
codegen_flags: <defaults>
</compile_context>

<pallas_src>
import functools
import math

import jax
import jax.numpy as jnp
from jax.experimental import pallas as pl
from jax.experimental.pallas import tpu as pltpu

EPS = 1e-6  # PyTorch pairwise_distance / TripletMarginLoss default eps


def _siamese_loss_kernel(z_ref, zh_ref, l_ref, o_ref, *, margin, feat_dim, n_rows):
    i = pl.program_id(0)
    tile_rows = z_ref.shape[0]

    # diff in the input dtype, single upcast to f32 (free for f32 inputs).
    diff = (z_ref[...] - zh_ref[...]).astype(jnp.float32)            # (tile_n, D)
    lab = l_ref[...].astype(jnp.float32)                              # (tile_n, 1)

    # Row reductions on the (otherwise idle) MXU.  rhs is exactly 1.0, accumulation is f32,
    # precision=HIGHEST selects the fp32 contract path -> numerically equivalent to jnp.sum.
    ones_rhs = jnp.ones((feat_dim, 128), jnp.float32)
    s2 = jnp.dot(diff * diff, ones_rhs,
                 precision=jax.lax.Precision.HIGHEST,
                 preferred_element_type=jnp.float32)[:, :1]           # ||diff||^2   (tile_n, 1)
    s1 = jnp.dot(diff, ones_rhs,
                 precision=jax.lax.Precision.HIGHEST,
                 preferred_element_type=jnp.float32)[:, :1]           # sum(diff)    (tile_n, 1)

    # dist(z, z_hat) = ||z - z_hat||_2
    d = jnp.sqrt(s2)

    # TripletMarginLoss(z, z, z_hat):
    #   d_ap = ||z - z + eps||_2      = eps * sqrt(D)                       (constant)
    #   d_an = ||z - z_hat + eps||_2  = sqrt(s2 + 2*eps*s1 + eps^2 * D)
    d_ap = jnp.float32(EPS * math.sqrt(feat_dim))
    an2 = jnp.maximum(
        s2 + jnp.float32(2.0 * EPS) * s1 + jnp.float32(EPS * EPS * feat_dim), 0.0)
    trip = jnp.maximum(d_ap - jnp.sqrt(an2) + jnp.float32(margin), 0.0)

    # Exact PyTorch combine (labels assumed 0/1; soft labels behave identically to reference).
    per_node = d * (lab == 0.0).astype(jnp.float32) + trip * lab      # (tile_n, 1)

    # Mask Pallas-padded rows of the ragged boundary tile (garbage may be NaN -> use where).
    row = jax.lax.broadcasted_iota(jnp.int32, (tile_rows, 1), 0) + i * tile_rows
    per_node = jnp.where(row < n_rows, per_node, 0.0)

    tile_sum = jnp.sum(per_node)                                      # scalar partial sum
    o_ref[...] = jnp.broadcast_to(tile_sum.reshape(1, 1, 1), (1, 8, 128))


@functools.lru_cache(maxsize=None)
def _vmem_budgets():
    """(vmem_limit_bytes, tile_budget_bytes), chosen per TPU generation."""
    cap = 0
    try:
        cap = int(pltpu.get_tpu_info().vmem_capacity_bytes)
    except Exception:
        cap = 0
    if cap >= 100 * 1024 * 1024:
        # v5e / v6e class: 128 MiB physical VMEM.
        return 80 * 1024 * 1024, 48 * 1024 * 1024
    # v7x class (64 MiB physical) or unknown: conservative but safe on every part.
    return 44 * 1024 * 1024, 20 * 1024 * 1024


def _pick_tile_n(n, d, in_itemsize, tile_budget_bytes):
    """Largest row tile whose double-buffered VMEM footprint fits the budget."""
    granule = max(8, 32 // max(1, int(in_itemsize)))   # 8 f32 / 16 bf16 / 32 int8 sublane packing
    d_pad = ((d + 127) // 128) * 128                   # VMEM lane padding
    # Per-row bytes: 2 pipeline buffers x (z + z_hat + lane-padded f32 label column),
    # plus ~2 (tile_n, 128) f32 MXU-result temporaries inside the kernel.
    per_row = 2 * (2 * d_pad * in_itemsize + 128 * 4) + 2 * 128 * 4
    fixed = (((d + 7) // 8) * 8) * 128 * 4             # ones(D, 128) MXU rhs constant
    t = max(0, tile_budget_bytes - fixed) // per_row
    t = int(t // granule * granule)
    t = max(granule, min(t, 16384))
    # Keep >= 2 grid steps whenever possible so both v7x TensorCores share the work
    # (on single-TC v5e/v6e this only bounds the tile by the row count).
    half = -(-n // 2)
    half = ((half + granule - 1) // granule) * granule
    return max(granule, min(t, half))


def siamese_contrastive_loss(z, z_hat, l, adj=None, *, margin=0.5, tile_n=None):
    """Pallas TPU implementation of SiameseContrastiveLoss.forward.  `adj` is unused."""
    del adj  # the reference forward never reads it
    n, d = z.shape
    vmem_limit, tile_budget = _vmem_budgets()
    if tile_n is None:
        tile_n = _pick_tile_n(n, d, jnp.dtype(z.dtype).itemsize, tile_budget)

    l2d = jnp.reshape(l, (n, 1))                    # metadata-only reshape
    if not jnp.issubdtype(l2d.dtype, jnp.floating):
        l2d = l2d.astype(jnp.float32)               # only for int/bool labels (tiny)

    num_tiles = pl.cdiv(n, tile_n)
    kernel = functools.partial(
        _siamese_loss_kernel, margin=float(margin), feat_dim=int(d), n_rows=int(n))

    partials = pl.pallas_call(
        kernel,
        out_shape=jax.ShapeDtypeStruct((num_tiles, 8, 128), jnp.float32),
        grid_spec=pltpu.PrefetchScalarGridSpec(
            num_scalar_prefetch=0,
            grid=(num_tiles,),
            in_specs=[
                pl.BlockSpec((tile_n, d), lambda i: (i, 0)),
                pl.BlockSpec((tile_n, d), lambda i: (i, 0)),
                pl.BlockSpec((tile_n, 1), lambda i: (i, 0)),
            ],
            out_specs=pl.BlockSpec((1, 8, 128), lambda i: (i, 0, 0)),
        ),
        compiler_params=pltpu.CompilerParams(
            # Every grid step writes its own output block -> no carried reduction;
            # the axis is truly parallel (shardable across v7x TensorCores).
            dimension_semantics=("parallel",),
            vmem_limit_bytes=vmem_limit,
        ),
    )(z, z_hat, l2d)

    # num_tiles partial sums -> final mean (negligible vs. input traffic).
    return jnp.sum(partials[:, 0, 0]) / jnp.float32(n)


def _reference(z, z_hat, l, margin):
    """Pure-JAX reference mirroring the PyTorch forward (literal, un-fused form)."""
    l = l.reshape(-1).astype(jnp.float32)
    diff = z.astype(jnp.float32) - z_hat.astype(jnp.float32)
    dist = jnp.sqrt(jnp.sum(diff * diff, axis=1))
    d_ap = EPS * jnp.sqrt(jnp.float32(z.shape[1]))
    d_an = jnp.sqrt(jnp.sum((diff + EPS) ** 2, axis=1))
    trip = jnp.maximum(d_ap - d_an + margin, 0.0)
    loss = dist * (l == 0).astype(jnp.float32) + trip * l
    return jnp.mean(loss)


if __name__ == "__main__":
    key = jax.random.PRNGKey(0)
    k1, k2, k3 = jax.random.split(key, 3)
    MARGIN = 0.5

    # Small shapes consistent with the module: N nodes, D-dim embeddings, 0/1 anomaly labels.
    N, D = 16, 32
    z = jax.random.normal(k1, (N, D), dtype=jnp.float32)
    z_hat = jax.random.normal(k2, (N, D), dtype=jnp.float32)
    l = (jax.random.uniform(k3, (N,)) > 0.5).astype(jnp.float32)
    adj = jnp.zeros((N, N), dtype=jnp.float32)  # unused by forward

    out = jax.block_until_ready(siamese_contrastive_loss(z, z_hat, l, adj, margin=MARGIN))
    ref = _reference(z, z_hat, l, MARGIN)
    # Tolerance leaves slack for MXU fp32 multi-pass rounding / summation-order differences.
    assert jnp.allclose(out, ref, rtol=1e-3, atol=1e-4), (out, ref)

    # Ragged N (not a multiple of the tile): exercises the cdiv grid + boundary-row masking
    # of the in-kernel partial sum.
    N2, D2 = 52, 64
    z2 = jax.random.normal(k1, (N2, D2), dtype=jnp.float32)
    zh2 = jax.random.normal(k2, (N2, D2), dtype=jnp.float32)
    l2 = (jax.random.uniform(k3, (N2,)) > 0.5).astype(jnp.float32)
    out2 = jax.block_until_ready(siamese_contrastive_loss(z2, zh2, l2, None, margin=MARGIN))
    ref2 = _reference(z2, zh2, l2, MARGIN)
    assert jnp.allclose(out2, ref2, rtol=1e-3, atol=1e-4), (out2, ref2)

    print("KERNEL_OK")
</pallas_src>

<mosaic_0001>
module attributes {stable_mosaic.version = 11 : i64} {
  func.func @_siamese_loss_kernel(%arg0: i32, %arg1: memref<8x32xf32, #tpu.memory_space<vmem>>, %arg2: memref<8x32xf32, #tpu.memory_space<vmem>>, %arg3: memref<8x1xf32, #tpu.memory_space<vmem>>, %arg4: memref<1x8x128xf32, #tpu.memory_space<vmem>>) attributes {dimension_semantics = [#tpu.dimension_semantics<parallel>], iteration_bounds = array<i64: 2>, scalar_prefetch = 0 : i64, scratch_operands = 0 : i64, tpu.core_type = #tpu.core_type<tc>, window_params = [{transform_indices = @transform_0, window_bounds = array<i64: 8, 32>}, {transform_indices = @transform_1, window_bounds = array<i64: 8, 32>}, {transform_indices = @transform_2, window_bounds = array<i64: 8, 1>}, {transform_indices = @transform_3, window_bounds = array<i64: 1, 8, 128>}]} {
    %c0 = arith.constant 0 : index
    %c0_0 = arith.constant 0 : index
    %0 = vector.load %arg1[%c0, %c0_0] : memref<8x32xf32, #tpu.memory_space<vmem>>, vector<8x32xf32>
    %c0_1 = arith.constant 0 : index
    %c0_2 = arith.constant 0 : index
    %1 = vector.load %arg2[%c0_1, %c0_2] : memref<8x32xf32, #tpu.memory_space<vmem>>, vector<8x32xf32>
    %2 = arith.subf %0, %1 : vector<8x32xf32>
    %c0_3 = arith.constant 0 : index
    %c0_4 = arith.constant 0 : index
    %3 = vector.load %arg3[%c0_3, %c0_4] : memref<8x1xf32, #tpu.memory_space<vmem>>, vector<8x1xf32>
    %cst = arith.constant 1.000000e+00 : f32
    %4 = vector.broadcast %cst : f32 to vector<32x128xf32>
    %5 = arith.mulf %2, %2 : vector<8x32xf32>
    %cst_5 = arith.constant dense<0.000000e+00> : vector<8x128xf32>
    %6 = tpu.matmul %5, %4, %cst_5 {dimension_numbers = #tpu.dot_dimension_numbers<[1], [0], [0], [1], [0, 0, 1, 1], [], []>, precision = #tpu.contract_precision<fp32>} : vector<8x32xf32>, vector<32x128xf32>, vector<8x128xf32> -> vector<8x128xf32>
    %7 = vector.extract_strided_slice %6 {offsets = [0, 0], sizes = [8, 1], strides = [1, 1]} : vector<8x128xf32> to vector<8x1xf32>
    %cst_6 = arith.constant dense<0.000000e+00> : vector<8x128xf32>
    %8 = tpu.matmul %2, %4, %cst_6 {dimension_numbers = #tpu.dot_dimension_numbers<[1], [0], [0], [1], [0, 0, 1, 1], [], []>, precision = #tpu.contract_precision<fp32>} : vector<8x32xf32>, vector<32x128xf32>, vector<8x128xf32> -> vector<8x128xf32>
    %9 = vector.extract_strided_slice %8 {offsets = [0, 0], sizes = [8, 1], strides = [1, 1]} : vector<8x128xf32> to vector<8x1xf32>
    %10 = math.sqrt %7 : vector<8x1xf32>
    %cst_7 = arith.constant 2.000000e-06 : f32
    %11 = vector.broadcast %cst_7 : f32 to vector<8x1xf32>
    %12 = arith.mulf %11, %9 : vector<8x1xf32>
    %13 = arith.addf %7, %12 : vector<8x1xf32>
    %cst_8 = arith.constant 3.200000e-11 : f32
    %14 = vector.broadcast %cst_8 : f32 to vector<8x1xf32>
    %15 = arith.addf %13, %14 : vector<8x1xf32>
    %cst_9 = arith.constant 0.000000e+00 : f32
    %16 = vector.broadcast %cst_9 : f32 to vector<8x1xf32>
    %17 = arith.maximumf %15, %16 : vector<8x1xf32>
    %18 = math.sqrt %17 : vector<8x1xf32>
    %cst_10 = arith.constant 5.65685423E-6 : f32
    %19 = vector.broadcast %cst_10 : f32 to vector<8x1xf32>
    %20 = arith.subf %19, %18 : vector<8x1xf32>
    %cst_11 = arith.constant 5.000000e-01 : f32
    %21 = vector.broadcast %cst_11 : f32 to vector<8x1xf32>
    %22 = arith.addf %20, %21 : vector<8x1xf32>
    %cst_12 = arith.constant 0.000000e+00 : f32
    %23 = vector.broadcast %cst_12 : f32 to vector<8x1xf32>
    %24 = arith.maximumf %22, %23 : vector<8x1xf32>
    %cst_13 = arith.constant 0.000000e+00 : f32
    %25 = vector.broadcast %cst_13 : f32 to vector<8x1xf32>
    %26 = arith.cmpf oeq, %3, %25 : vector<8x1xf32>
    %27 = arith.extui %26 : vector<8x1xi1> to vector<8x1xi32>
    %28 = arith.sitofp %27 : vector<8x1xi32> to vector<8x1xf32>
    %29 = arith.mulf %10, %28 : vector<8x1xf32>
    %30 = arith.mulf %24, %3 : vector<8x1xf32>
    %31 = arith.addf %29, %30 : vector<8x1xf32>
    %32 = tpu.iota {dimensions = array<i32: 0>} : vector<8x1xi32>
    %c8_i32 = arith.constant 8 : i32
    %33 = arith.muli %arg0, %c8_i32 : i32
    %34 = vector.broadcast %33 : i32 to vector<8x1xi32>
    %35 = arith.addi %32, %34 : vector<8x1xi32>
    %c16_i32 = arith.constant 16 : i32
    %36 = vector.broadcast %c16_i32 : i32 to vector<8x1xi32>
    %37 = arith.cmpi slt, %35, %36 : vector<8x1xi32>
    %cst_14 = arith.constant 0.000000e+00 : f32
    %38 = vector.broadcast %cst_14 : f32 to vector<8x1xf32>
    %39 = arith.select %37, %31, %38 : vector<8x1xi1>, vector<8x1xf32>
    %40 = vector.shape_cast %39 : vector<8x1xf32> to vector<1x8x1xf32>
    %cst_15 = arith.constant dense<0.000000e+00> : vector<1xf32>
    %41 = vector.multi_reduction <add>, %40, %cst_15 [1, 2] : vector<1x8x1xf32> to vector<1xf32>
    %42 = vector.shape_cast %41 : vector<1xf32> to vector<1x1x1xf32>
    %43 = vector.extract %42[0, 0, 0] : f32 from vector<1x1x1xf32>
    %44 = vector.broadcast %43 : f32 to vector<1x1x1xf32>
    %45 = vector.shape_cast %44 : vector<1x1x1xf32> to vector<1x1x1xf32>
    %46 = vector.broadcast %45 : vector<1x1x1xf32> to vector<1x8x128xf32>
    %c0_16 = arith.constant 0 : index
    %c0_17 = arith.constant 0 : index
    %c0_18 = arith.constant 0 : index
    %47 = vector.load %arg4[%c0_16, %c0_17, %c0_18] : memref<1x8x128xf32, #tpu.memory_space<vmem>>, vector<1x8x128xf32>
    tpu.vector_store %arg4[%c0_16, %c0_17, %c0_18], %46 {strides = array<i32>} : memref<1x8x128xf32, #tpu.memory_space<vmem>>, vector<1x8x128xf32>,
    return
  }
  func.func @transform_0(%arg0: i32) -> (i32, i32) {
    %c0_i32 = arith.constant 0 : i32
    %c0_i32_0 = arith.constant 0 : i32
    return %arg0, %c0_i32 : i32, i32
  }
  func.func @transform_1(%arg0: i32) -> (i32, i32) {
    %c0_i32 = arith.constant 0 : i32
    %c0_i32_0 = arith.constant 0 : i32
    return %arg0, %c0_i32 : i32, i32
  }
  func.func @transform_2(%arg0: i32) -> (i32, i32) {
    %c0_i32 = arith.constant 0 : i32
    %c0_i32_0 = arith.constant 0 : i32
    return %arg0, %c0_i32 : i32, i32
  }
  func.func @transform_3(%arg0: i32) -> (i32, i32, i32) {
    %c0_i32 = arith.constant 0 : i32
    %c0_i32_0 = arith.constant 0 : i32
    %c0_i32_1 = arith.constant 0 : i32
    return %arg0, %c0_i32, %c0_i32_0 : i32, i32, i32
  }
}

</mosaic_0001>

<bundles_post_ra>
// kernel: tpu_custom_call.1
= control target key start
LH: loop header
LB: loop body
LE: loop exit
PB: predicated region body
PF: predicated region fallthrough
CT: control target
= control target key end

     0   :  { %8 = vsyncpa [#allocation3], 0  ;;  %s1014_s0 = inlined_call_operand.vmem [shape: f32[16,32], index: 0, kind: input, shape index: {}]   ;;  %s1015_s1 = inlined_call_operand.hbm [shape: f32[16,32], index: 1, kind: input, shape index: {}]   ;;  %s1016_s2 = inlined_call_operand.vmem [shape: f32[16,1], index: 2, kind: input, shape index: {}]   ;;  %s1017_s3 = inlined_call_operand.hbm [shape: f32[2,8,128], index: 3, kind: output, shape index: {}]  }
   0x1   :  { %10 = vsyncpa [#allocation3 + $0x1], 0 }
   0x2   :  { %11 = vsyncpa [#allocation4], 0 }
   0x3   :  { %13 = vsyncpa [#allocation4 + $0x1], 0  ;;  %s857_s12 = smov 0   ;;  %s859_s13 = smov 0  }
   0x4   :  { %s861_s14 = smov 0   ;;  %s863_s15 = smov 0  }
   0x5 LB: > { %s878_s16 = sadd.s32 4294967295, %s833_s15   ;;  %s667_s17 = sadd.s32 4294967294, %s833_s15   ;;  %s833_s15 = sphi %s863_s15, %s1027_s15   ;;  %s829_s14 = sphi %s861_s14, %s1026_s14   ;;  %s825_s13 = sphi %s859_s13, %s1025_s13   ;;  %s821_s12 = sphi %s857_s12, %s1024_s12  }
   0x6   : > { %s882_s18 = sadd.s32 1, %s833_s15   ;;  %s52_s19 = sadd.s32 1, %s829_s14 }
   0x7   : > { %s49_s20 = ssub.s32 %s833_s15, %s882_s18  ;;  %p59_p0 = scmp.ne.s32.totalorder %s829_s14, %s825_s13 }
   0x8   : > { %p50_p1 = scmp.eq.s32.totalorder %s49_s20, 0  ;;  %p60_p2 = scmp.eq.s32.totalorder %s833_s15, 0 }
   0x9   : > { %p65_p3 = scmp.ne.s32.totalorder %s825_s13, %s821_s12  ;;  %p66_p4 = scmp.eq.s32.totalorder %s878_s16, 0 }
   0xa   : > { %s894_s21 = scalar_select %p50_p1, %s829_s14, %s52_s19  }
   0xb   : > { %p896_p5 = por %p60_p2, %p59_p0  ;;  %p900_p6 = por %p66_p4, %p65_p3 }
   0xc   : > { %p115_p7 = scmp.eq.s32.totalorder %s878_s16, 1  ;;  %p121_p8 = scmp.eq.s32.totalorder %s667_s17, 1 }
   0xd   : > { %p697_p10 = scmp.lt.s32.totalorder %s833_s15, 2  ;;  %s148_s26 = sand.u32 1, %s829_s14  }
   0xe   : > { %p907_p11 = por %p115_p7, %p59_p0  ;;  %p911_p12 = por %p121_p8, %p65_p3 }
   0xf   : > { %s671_s27 = sshll.u32 %s833_s15, 3  ;;  %s670_s28 = sshll.u32 %s148_s26, 3 }
  0x10   : > { %s156_s4 = scalar_lea.hbm %s1015_s1, %s671_s27  ;;  %s152_s6 = scalar_lea.vmem [#allocation2], %s670_s28 }
  0x11   : > { %s158_s5 = sshll.u32 %s156_s4, 4  ;;  %s160_s7 = sshll.u32 %s152_s6, 4  ;;  %s159_s5 = int_to_ptr.hbm [resolvable:$true] %s158_s5  ;;  %s161_s7 = int_to_ptr.vmem [resolvable:$true] %s160_s7 }
  0x12   : > { %p922_p13 = pnand %p697_p10, %p896_p5  ;;  %p672_p0 = scmp.ge.s32.totalorder %s833_s15, 1 }
  0x13   : > { %p172_p1 = scmp.lt.s32.totalorder %s833_s15, 3  ;;  %s149_s9 = scalar_lea.sflag [#allocation3], %s148_s26 }
  0x14   : > { %s737_s10 = sshra.s32 %s159_s5, 4  ;;  %p741_p3 = pneg %p922_p13  ;;  %s738_s10 = int_to_ptr.hbm [resolvable:$true] %s737_s10 }
  0x15   : > { %s739_s11 = scalar_lea.hbm %s738_s10, 8  ;;  %s744_s20 = scalar_lea.hbm %s1015_s1, 16 }
  0x16   : > { %p740_p2 = scmp.ne.s32.totalorder %s738_s10, %s739_s11  ;;  %p745_p5 = scmp.lt.s32.totalorder %s738_s10, %s1015_s1 }
  0x17   : > { %p746_p8 = scmp.lt.s32.totalorder %s744_s20, %s739_s11 }
  0x18   : > { %p742_p4 = pnand %p741_p3, %p740_p2 }
  0x19   : > { %p747_p10 = por %p746_p8, %p745_p5 }
  0x1a   : > { %p743_p7 = pneg %p742_p4 }
  0x1c   : > { %p748_p9 = pnand %p747_p10, %p743_p7 }
  0x1e   : > { %751 = shalt.err (!%p748_p9)
}
  0x1f   : > { %692 = dma.hbm_to_vmem [thread:$0]  (!%p922_p13), %s159_s5, 128, %s161_s7, %s149_s9  }
  0x20   : > { %p173_p2 = pnand %p672_p0, %p172_p1 }
  0x21   : > { %s943_s26 = sand.u32 (!%p173_p2), 1, %s825_s13  }
  0x22   : > { %176 = sbr.rel (%p173_p2) target bundleno = 433 (0x1b1), region = 32  ;;  %s673_s28 = sshll.u32 (!%p173_p2), %s943_s26, 3 }
  0x23   : > { %s179_s29 = scalar_lea.sflag (!%p173_p2), [#allocation3], %s943_s26  ;;  %s182_s30 = scalar_lea.vmem (!%p173_p2), [#allocation2], %s673_s28 }
  0x27   : > { %812 = dma.done.wait (%p900_p6), %s179_s29, 128  }
  0x28   : > { %814 = vsyncadd (%p900_p6), %s179_s29, 4294967168  ;;  %p214_p9 = scmp.lt.s32.totalorder %s878_s16, 1  ;;  %v835_v0 = vmov 1.0   ;;  %v836_v1 = vmov 0.0   ;;  %v223_v3 = vld [vmem:[%s182_s30] sm:$0xff]  ;;  %vm227_vm0 = vcmask 261120   ;;  %v537_v56 = vlaneseq }
  0x29   : > { %311 = vmatpush.msra.mxu3 %v835_v0  ;;  %243 = vmatpush.msra.mxu0 %v835_v0  ;;  %s678_s11 = sshll.u32 %s878_s16, 3  ;;  %vm544_vm7 = vcmask 7168   ;;  %s213_s22 = scalar_lea.vmem [#allocation5], %s673_s28 }
  0x2a   : > { %292 = vmatpush.msra.mxu2 %v836_v1  ;;  %s956_s4 = scalar_select %p214_p9, %s878_s16, 1  ;;  %271 = vmatpush.msra.mxu1 %v836_v1  ;;  %v538_v63 = vshrl.u32 %v537_v56, 7 }
  0x2b   : > { %312 = vmatpush.msra.mxu3 %v835_v0  ;;  %244 = vmatpush.msra.mxu0 %v835_v0  ;;  %s568_s20 = scalar_lea.hbm %s1017_s3, %s678_s11  ;;  %s570_s27 = sshll.u32 %s213_s22, 4  ;;  %s571_s27 = int_to_ptr.vmem [resolvable:$true] %s570_s27 }
  0x2c   : > { %355 = vmatpush.msrb.mxu2 %v835_v0  ;;  %s675_s5 = sshll.u32 %s956_s4, 3  ;;  %337 = vmatpush.msrb.mxu1 %v836_v1  ;;  %s572_s29 = sshll.u32 %s568_s20, 4  ;;  %s573_s29 = int_to_ptr.hbm [resolvable:$true] %s572_s29 }
  0x2d   : > { %313 = vmatpush.msra.mxu3 %v835_v0  ;;  %s217_s7 = scalar_lea.vmem %s1014_s0, %s675_s5  ;;  %245 = vmatpush.msra.mxu0 %v835_v0  ;;  %s221_s10 = scalar_lea.vmem %s1016_s2, %s675_s5 }
  0x2e   : > { %356 = vmatpush.msrb.mxu2 %v835_v0  ;;  %v222_v2 = vld [vmem:[%s217_s7] sm:$0xff]  ;;  %s558_s4 = scalar_lea.sflag [#allocation4], %s943_s26  ;;  %s781_s5 = sshra.s32 %s573_s29, 4  ;;  %s782_s5 = int_to_ptr.hbm [resolvable:$true] %s781_s5 }
  0x2f   : > { %314 = vmatpush.msra.mxu3 %v835_v0  ;;  %v224_v4 = vsub.f32 %v222_v2, %v223_v3  ;;  %246 = vmatpush.msra.mxu0 %v835_v0  ;;  %v225_v59 = vld [vmem:[%s221_s10] sm:$0xff]  ;;  %v540_v3 = vstv %s678_s11  ;;  %s783_s23 = scalar_lea.hbm %s782_s5, 8  ;;  %s787_s7 = scalar_lea.hbm %s1017_s3, 16 }
  0x30   : > { %357 = vmatpush.msrb.mxu2 %v835_v0  ;;  %vm531_vm4 = vcmp.eq.f32.partialorder %v225_v59, 0.0  ;;  %p784_p6 = scmp.ne.s32.totalorder %s782_s5, %s783_s23  ;;  %p788_p1 = scmp.lt.s32.totalorder %s782_s5, %s1017_s3 }
  0x31   : > { %407 = vmatpush.msrb.mxu3 %v836_v1  ;;  %379 = vmatpush.msrb.mxu0 %v835_v0  ;;  %v226_v5 = vmul.f32 %v224_v4, %v224_v4  ;;  %v365_v6 = vsel %vm227_vm0, %v224_v4, 0  ;;  %p789_p3 = scmp.lt.s32.totalorder %s787_s7, %s783_s23 }
  0x32   : > { %358 = vmatpush.msrb.mxu2 %v835_v0  ;;  %v383_v7 = vand.u32 4294901760, %v365_v6  ;;  %p785_p13 = pnand %p784_p6, %p907_p11 }
  0x33   : > { %380 = vmatpush.msrb.mxu0 %v835_v0  ;;  %v229_v8 = vsel %vm227_vm0, %v226_v5, 0  ;;  %p790_p4 = por %p789_p3, %p788_p1 }
  0x34   : > { %v247_v9 = vand.u32 4294901760, %v229_v8  ;;  %v384_v11 = vsub.f32 %v365_v6, %v383_v7  ;;  %p786_p0 = pneg %p785_p13 }
  0x35   : > { %381 = vmatpush.msrb.mxu0 %v835_v0 }
  0x36   : > { %v248_v10 = vsub.f32 %v229_v8, %v247_v9  ;;  %273 = vmatmul.f32.vlgmr.msra.gmra.mxu1 %v247_v9  ;;  %v385_v14 = vand.u32 4294901760, %v384_v11  ;;  %v541_v8 = vadd.s32 %v540_v3, %v538_v63  ;;  %p791_p7 = pnand %p790_p4, %p786_p0 }
  0x37   : > { %382 = vmatpush.msrb.mxu0 %v835_v0  ;;  %428 = vmatpush.msra.mxu1 %v836_v1 }
  0x38   : > { %295 = vmatmul.f32.vlgmr.msra.gmra.mxu2 %v248_v10  ;;  %v249_v12 = vand.u32 4294901760, %v248_v10  ;;  %v386_v16 = vsub.f32 %v384_v11, %v385_v14  ;;  %vm542_vm6 = vcmp.lt.s32.totalorder %v541_v8, 16 }
  0x39   : > { %447 = vmatpush.msra.mxu2 %v835_v0 }
  0x3a   : > { %318 = vmatmul.f32.vlgmr.msra.gmra.mxu3 %v249_v12  ;;  %v250_v13 = vsub.f32 %v248_v10, %v249_v12  ;;  %v387_v17 = vand.u32 4294901760, %v386_v16 }
  0x3b   : > { %448 = vmatpush.msra.mxu2 %v835_v0  ;;  %491 = vmatpush.msra.mxu3 %v835_v0 }
  0x3c   : > { %v251_v15 = vand.u32 4294901760, %v250_v13 }
  0x3d   : > { %449 = vmatpush.msra.mxu2 %v835_v0  ;;  %492 = vmatpush.msra.mxu3 %v835_v0 }
  0x3e   : > { %252 = vmatmul.f32.vlgmr.msra.gmra.mxu0 %v251_v15  ;;  %339 = vmatmul.f32.vlgmr.msrb.gmra.mxu1 %v247_v9 }
  0x3f   : > { %450 = vmatpush.msra.mxu2 %v835_v0  ;;  %473 = vmatpush.msra.mxu0 %v836_v1 }
  0x40   : > { %360 = vmatmul.f32.vlgmr.msrb.gmra.mxu2 %v247_v9  ;;  %493 = vmatpush.msra.mxu3 %v835_v0 }
  0x42   : > { %409 = vmatmul.f32.vlgmr.msrb.gmra.mxu3 %v383_v7 }
  0x43   : > { %494 = vmatpush.msra.mxu3 %v835_v0 }
  0x46   : > { %388 = vmatmul.f32.vlgmr.msrb.gmra.mxu0 %v387_v17  ;;  %431 = vmatmul.f32.vlgmr.msra.gmra.mxu1 %v384_v11 }
  0x48   : > { %454 = vmatmul.f32.vlgmr.msra.gmra.mxu2 %v385_v14 }
  0x4a   : > { %496 = vmatmul.f32.vlgmr.msra.gmra.mxu3 %v383_v7 }
  0x4e   : > { %475 = vmatmul.f32.vlgmr.msra.gmra.mxu0 %v383_v7  ;;  %v677_v7 = vsel %vm531_vm4, 1.0, %v836_v1 }
  0xb3   : > { %v274_v18 = vpop.f32.mrf.mxu1 }
  0xbb   : > { %v253_v19 = vpop.f32.mrf.mxu0  ;;  %v296_v20 = vpop.f32.mrf.mxu2 }
  0xbc   : > { %v275_v21 = vadd.f32 %v274_v18, %v253_v19  ;;  %v340_v23 = vpop.f32.mrf.mxu1 }
  0xbd   : > { %v319_v22 = vpop.f32.mrf.mxu3 }
  0xbe   : > { %v297_v24 = vadd.f32 %v296_v20, %v275_v21 }
  0xc0   : > { %v320_v25 = vadd.f32 %v319_v22, %v297_v24 }
  0xc2   : > { %v341_v29 = vadd.f32 %v340_v23, %v320_v25 }
  0xc3   : > { %v361_v26 = vpop.f32.mrf.mxu2  ;;  %v389_v27 = vpop.f32.mrf.mxu0 }
  0xc4   : > { %v432_v31 = vpop.f32.mrf.mxu1  ;;  %v362_v32 = vadd.f32 %v361_v26, %v341_v29 }
  0xc5   : > { %v410_v28 = vpop.f32.mrf.mxu3 }
  0xc6   : > { %v411_v30 = vadd.f32 %v410_v28, %v389_v27  ;;  %733 = vrsqrt.f32 %v362_v32  ;;  %vm507_vm3 = vcmp.eq.f32.partialorder %v362_v32, inf  ;;  %v510_v4 = vand.u32 2147483648, %v362_v32 }
  0xc7   : > { %vm509_vm5 = vcmp.eq.f32.partialorder %v362_v32, 0.0 }
  0xc8   : > { %v433_v33 = vadd.f32 %v432_v31, %v411_v30 }
  0xcb   : > { %v455_v34 = vpop.f32.mrf.mxu2  ;;  %v476_v35 = vpop.f32.mrf.mxu0 }
  0xcc   : > { %v456_v36 = vadd.f32 %v455_v34, %v433_v33  ;;  %v734_v41 = vpop.eup %733 }
  0xcd   : > { %v497_v37 = vpop.f32.mrf.mxu3  ;;  %v501_v44 = vmul.f32 %v734_v41, %v362_v32 }
  0xce   : > { %v477_v38 = vadd.f32 %v476_v35, %v456_v36 }
  0xcf   : > { %v502_v46 = vmul.f32 %v734_v41, %v501_v44 }
  0xd0   : > { %v498_v39 = vadd.f32 %v497_v37, %v477_v38 }
  0xd1   : > { %v503_v47 = vmul.f32 0.5, %v502_v46 }
  0xd2   : > { %v512_v40 = vmul.f32 2e-06, %v498_v39 }
  0xd3   : > { %v504_v50 = vsub.f32 1.5, %v503_v47 }
  0xd4   : > { %v513_v42 = vadd.f32 %v512_v40, %v362_v32 }
  0xd5   : > { %v505_v53 = vmul.f32 %v734_v41, %v504_v50 }
  0xd6   : > { %v514_v43 = vadd.f32 3.2e-11, %v513_v42 }
  0xd7   : > { %v506_v57 = vmul.f32 %v505_v53, %v362_v32 }
  0xd8   : > { %v515_v45 = vmax.f32 %v514_v43, 0.0 }
  0xd9   : > { %v508_v0 = vsel %vm507_vm3, %v362_v32, %v506_v57 }
  0xda   : > { %735 = vrsqrt.f32 %v515_v45  ;;  %vm523_vm1 = vcmp.eq.f32.partialorder %v515_v45, inf  ;;  %v526_v60 = vand.u32 2147483648, %v515_v45  ;;  %vm525_vm2 = vcmp.eq.f32.partialorder %v515_v45, 0.0 }
  0xdb   : > { %v511_v6 = vsel %vm509_vm5, %v510_v4, %v508_v0 }
  0xdc   : > { %v534_v10 = vmul.f32 %v677_v7, %v511_v6 }
  0xe0   : > { %v736_v48 = vpop.eup %735 }
  0xe1   : > { %v517_v49 = vmul.f32 %v736_v48, %v515_v45 }
  0xe3   : > { %v518_v51 = vmul.f32 %v736_v48, %v517_v49 }
  0xe5   : > { %v519_v52 = vmul.f32 0.5, %v518_v51 }
  0xe7   : > { %v520_v54 = vsub.f32 1.5, %v519_v52 }
  0xe9   : > { %v521_v55 = vmul.f32 %v736_v48, %v520_v54 }
  0xeb   : > { %v522_v58 = vmul.f32 %v521_v55, %v515_v45 }
  0xed   : > { %v524_v61 = vsel %vm523_vm1, %v515_v45, %v522_v58 }
  0xee   : > { %v527_v62 = vsel %vm525_vm2, %v526_v60, %v524_v61 }
  0xef   : > { %v528_v2 = vsub.f32 5.6568542e-06, %v527_v62 }
  0xf1   : > { %v529_v5 = vadd.f32 0.5, %v528_v2 }
  0xf3   : > { %v530_v9 = vmax.f32 %v529_v5, 0.0 }
  0xf5   : > { %v535_v11 = vmul.f32 %v530_v9, %v225_v59 }
  0xf7   : > { %v536_v12 = vadd.f32 %v535_v11, %v534_v10 }
  0xf9   : > { %v543_v13 = vsel %vm542_vm6, %v536_v12, 0.0 }
  0xfa   : > { %v545_v14 = vsel %vm544_vm7, %v543_v13, 0.0 }
  0xfb   : > { %546 = vadd.xlane.f32.xlu0 %v545_v14 }
 0x16e   : > { %v547_v15 = vpop.xlane.xlu0 %546 }
 0x16f   : > { %v548_v16 = vrot.slane %v547_v15, 4 }
 0x171   : > { %v549_v17 = vadd.f32 %v548_v16, %v547_v15 }
 0x173   : > { %v550_v18 = vrot.slane %v549_v17, 2 }
 0x175   : > { %v551_v19 = vadd.f32 %v550_v18, %v549_v17 }
 0x177   : > { %v552_v20 = vrot.slane %v551_v19, 1 }
 0x179   : > { %v553_v1 = vadd.f32 %v552_v20, %v551_v19 }
 0x17b   : > { %683 = vpush %v553_v1 }
 0x1ac   : > { %s684_s30 = spop %683 }
 0x1ad   : > { %v555_v21 = vstv %s684_s30 }
 0x1ae   : > { %556 = vst [vmem:[%s213_s22] sm:$0xff] %v555_v21 }
 0x1af   : > { %794 = shalt.err (!%p791_p7)
}
 0x1b0   : > { %687 = dma.vmem_to_hbm [thread:$0]  (%p907_p11), %s571_s27, 128, %s573_s29, %s558_s4  }
 0x1b1 PF: > { %s584_s26 = sand.u32 1, %s821_s12   ;;  %p1023_p5 = scmp.ge.s32.totalorder %s833_s15, 2 }
 0x1b2   : > { %s585_s9 = scalar_lea.sflag [#allocation4], %s584_s26 }
 0x1b3   : > { %p694_p8 = pnand %p1023_p5, %p911_p12 }
 0x1b5   : > { %p695_p10 = pneg %p694_p8 }
 0x1b7   : > { %816 = dma.done.wait (%p695_p10), %s585_s9, 128  }
 0x1b8   : > { %818 = vsyncadd (%p695_p10), %s585_s9, 4294967168  ;;  %p16_p2 = scmp.ge.s32.totalorder %s882_s18, 4   ;;  %s1024_s12 = smov %s825_s13 }
 0x1b9   : > { %s1025_s13 = smov %s829_s14  ;;  %s1026_s14 = smov %s894_s21 }
 0x1ba   : > { %s1027_s15 = smov %s882_s18  ;;  %18 = sbr.rel (!%p16_p2) target bundleno = 5 (0x5), region = 83 }
 0x1bf   :  { %591 = vsyncpa [#allocation3], 1 }
 0x1c0   :  { %593 = vsyncpa [#allocation3 + $0x1], 1 }
 0x1c1   :  { %594 = vsyncpa [#allocation4], 1 }
 0x1c2   :  { %596 = vsyncpa [#allocation4 + $0x1], 1 }

</bundles_post_ra>
